<compile_context>
chip_gen: v5e
topology: v5e:2x2
jax: 0.10.0
libtpu: 0.0.40
codegen_flags: <defaults>
</compile_context>

<pallas_src>
import jax
import jax.numpy as jnp
from jax.experimental import pallas as pl
from jax.experimental.pallas import tpu as pltpu

LANE = 128      # last-dim blocks must be multiples of 128
SUBLANE = 16    # keep batch tiles a multiple of 16 (bf16 sublane packing)


def _round_up(x, m):
    return ((x + m - 1) // m) * m


def _cdiv(a, b):
    return -(-a // b)


def _vmem_budget_bytes():
    """Generation-aware VMEM ceiling: ~85% of physical (v5e/v6e: 128 MiB,
    v7x: 64 MiB). Falls back to a conservative 64 MiB assumption."""
    try:
        info = pltpu.get_tpu_info()
        phys = int(getattr(info, "vmem_capacity_bytes", 64 * 1024 * 1024))
    except Exception:
        phys = 64 * 1024 * 1024
    return int(0.85 * phys)


# ----------------------------------------------------------------------------
# Kernels
# ----------------------------------------------------------------------------
def _resident_kernel(x_ref, w1_ref, b1_ref, w2_ref, b2_ref, o_ref):
    """One batch tile; weights fully VMEM-resident.

    x_ref : [TB, Hp] (input dtype)   w1_ref: [Hp, Hp] bf16   b1_ref: [1, Hp] f32
    w2_ref: [Hp, Op] bf16            b2_ref: [1, Op] f32      o_ref : [TB, Op]
    """
    x = x_ref[...].astype(jnp.bfloat16)          # in-kernel cast (VPU, hidden under MXU)
    h = jnp.dot(x, w1_ref[...], preferred_element_type=jnp.float32)
    h = jnp.maximum(h + b1_ref[...], 0.0)
    y = jnp.dot(h.astype(jnp.bfloat16), w2_ref[...],
                preferred_element_type=jnp.float32)
    o_ref[...] = (y + b2_ref[...]).astype(o_ref.dtype)


def _streamed_kernel(x_ref, w1_ref, b1_ref, w2_ref, b2_ref, o_ref, acc_ref):
    """Large-H path: grid (batch tile i, hidden chunk k), weights streamed.

    Per k step:  h_k = relu(x @ w1[:, k_chunk] + b1[k_chunk])   (exact: ReLU
    is columnwise), then acc += h_k @ w2[k_chunk, :]. Finalized with b2 on the
    last k step. acc_ref is a [TB, Op] f32 VMEM scratch accumulator.
    """
    k = pl.program_id(1)

    @pl.when(k == 0)
    def _():
        acc_ref[...] = jnp.zeros_like(acc_ref)

    x = x_ref[...].astype(jnp.bfloat16)
    h = jnp.dot(x, w1_ref[...], preferred_element_type=jnp.float32)
    h = jnp.maximum(h + b1_ref[...], 0.0)
    acc_ref[...] += jnp.dot(h.astype(jnp.bfloat16), w2_ref[...],
                            preferred_element_type=jnp.float32)

    @pl.when(k == pl.num_programs(1) - 1)
    def _():
        o_ref[...] = (acc_ref[...] + b2_ref[...]).astype(o_ref.dtype)


# ----------------------------------------------------------------------------
# Wrapper
# ----------------------------------------------------------------------------
def prepare_params(w1, b1, w2, b2):
    """Pad + bf16-cast the weights ONCE (hoisted out of the per-call path).

    Hidden dim padded to a multiple of 256 when H > 128 (256-wide MXU on
    v6e/v7x), else 128; output dim padded to 128 (lane-dense stores). Zero
    padding is inert through matmul + ReLU. Biases stay f32."""
    H, O = w1.shape[0], w2.shape[1]
    Hp = _round_up(H, 256 if H > LANE else LANE)
    Op = _round_up(O, LANE)
    w1p = jnp.pad(w1, ((0, Hp - H), (0, Hp - H))).astype(jnp.bfloat16)
    w2p = jnp.pad(w2, ((0, Hp - H), (0, Op - O))).astype(jnp.bfloat16)
    b1p = jnp.pad(b1, (0, Hp - H)).reshape(1, Hp).astype(jnp.float32)
    b2p = jnp.pad(b2, (0, Op - O)).reshape(1, Op).astype(jnp.float32)
    return dict(w1=w1p, b1=b1p, w2=w2p, b2=b2p, H=H, O=O, Hp=Hp, Op=Op)


def task_head(x, params, *, batch_tile=512, out_dtype=None,
              force_streamed=False, tk=None):
    """TaskHead forward: relu(x @ w1 + b1) @ w2 + b2.

    `params` must come from prepare_params(). x: [..., H].
    Note: the batch tile depends on B, so callers should bucket batch sizes to
    avoid recompilation churn. Pass out_dtype=jnp.bfloat16 on v5e to halve
    output store bytes if bf16 output is acceptable."""
    H, O, Hp, Op = params["H"], params["O"], params["Hp"], params["Op"]
    w1p, b1p, w2p, b2p = params["w1"], params["b1"], params["w2"], params["b2"]

    orig_shape = x.shape
    assert orig_shape[-1] == H
    out_dtype = out_dtype or x.dtype
    x2 = x.reshape(-1, H)
    B = x2.shape[0]
    x_bytes = jnp.dtype(x2.dtype).itemsize
    out_bytes = jnp.dtype(out_dtype).itemsize

    # --- batch tiling: minimize ragged padding; keep >=2 tiles when possible
    # so v7x's two TensorCores both get a "parallel" grid step.
    n_tiles = max(1, _cdiv(B, batch_tile))
    if n_tiles == 1 and B > SUBLANE:
        n_tiles = 2
    TB = _round_up(_cdiv(B, n_tiles), SUBLANE)

    budget = _vmem_budget_bytes()

    def resident_fp(tb):  # single-buffered weights + double-buffered act tiles
        weights = Hp * Hp * 2 + Hp * Op * 2 + Hp * 4 + Op * 4
        act = 2 * tb * Hp * x_bytes + 2 * tb * Op * out_bytes
        temps = tb * Hp * 4 + tb * Op * 4 + tb * Hp * 2 + tb * Op * 2
        return weights + act + temps

    # Streamed-path hidden-dim chunk (multiple of 256 where possible).
    if tk is None:
        tk = next(t for t in (512, 256, 128) if Hp % t == 0)
    tk = min(tk, Hp)

    def streamed_fp(tb):  # double-buffered weight chunks + acc scratch
        weights = 2 * (Hp * tk * 2 + tk * Op * 2 + tk * 4) + Op * 4
        act = 2 * tb * Hp * x_bytes + 2 * tb * Op * out_bytes + tb * Op * 4
        temps = tb * tk * 4 + tb * Op * 4 + tb * Hp * 2 + tb * tk * 2
        return weights + act + temps

    use_streamed = force_streamed or int(1.25 * resident_fp(TB)) > budget
    fp_fn = streamed_fp if use_streamed else resident_fp

    # Shrink the batch tile until everything fits the (gen-specific) budget.
    while TB > SUBLANE and int(1.25 * fp_fn(TB)) > budget:
        TB = _round_up(TB // 2, SUBLANE)

    n_tiles = _cdiv(B, TB)
    Bp = n_tiles * TB

    # Pad x only when misaligned; no wrapper-side bf16 cast (kernel casts).
    xp = x2 if (Bp == B and Hp == H) else jnp.pad(x2, ((0, Bp - B), (0, Hp - H)))

    weight_bytes_once = (Hp * Hp + Hp * Op) * 2 + (Hp + Op) * 4
    flops = 2 * Bp * (Hp * Hp + Hp * Op)

    def run(single_buffer_weights):
        def wspec(shape, index_map):
            # Grid-invariant operands: 1 buffer instead of the default 2.
            if single_buffer_weights:
                return pl.BlockSpec(shape, index_map, pipeline_mode=pl.Buffered(1))
            return pl.BlockSpec(shape, index_map)

        if not use_streamed:
            bytes_accessed = (Bp * Hp * x_bytes + Bp * Op * out_bytes
                              + weight_bytes_once)
            vmem_bytes = min(max(int(1.4 * resident_fp(TB)), 16 * 1024 * 1024),
                             budget)
            return pl.pallas_call(
                _resident_kernel,
                out_shape=jax.ShapeDtypeStruct((Bp, Op), out_dtype),
                grid_spec=pltpu.PrefetchScalarGridSpec(
                    num_scalar_prefetch=0,
                    grid=(n_tiles,),
                    in_specs=[
                        pl.BlockSpec((TB, Hp), lambda i: (i, 0)),   # x: pipelined
                        wspec((Hp, Hp), lambda i: (0, 0)),          # w1: resident
                        wspec((1, Hp), lambda i: (0, 0)),           # b1
                        wspec((Hp, Op), lambda i: (0, 0)),          # w2: resident
                        wspec((1, Op), lambda i: (0, 0)),           # b2
                    ],
                    out_specs=pl.BlockSpec((TB, Op), lambda i: (i, 0)),
                ),
                compiler_params=pltpu.CompilerParams(
                    dimension_semantics=("parallel",),
                    vmem_limit_bytes=vmem_bytes,
                ),
                cost_estimate=pl.CostEstimate(
                    flops=flops, transcendentals=0,
                    bytes_accessed=bytes_accessed),
            )(xp, w1p, b1p, w2p, b2p)

        # Weight-streamed path (large H): K grid axis over the hidden dim.
        # (On v7x, deeper x buffering (pl.Buffered(3)) could be added; the x
        # block only changes once per Hp//tk steps so the default is fine.)
        nk = Hp // tk
        bytes_accessed = (Bp * Hp * x_bytes + Bp * Op * out_bytes
                          + n_tiles * weight_bytes_once)
        vmem_bytes = min(max(int(1.4 * streamed_fp(TB)), 16 * 1024 * 1024),
                         budget)
        return pl.pallas_call(
            _streamed_kernel,
            out_shape=jax.ShapeDtypeStruct((Bp, Op), out_dtype),
            grid_spec=pltpu.PrefetchScalarGridSpec(
                num_scalar_prefetch=0,
                grid=(n_tiles, nk),
                in_specs=[
                    pl.BlockSpec((TB, Hp), lambda i, k: (i, 0)),  # x (reused over k)
                    pl.BlockSpec((Hp, tk), lambda i, k: (0, k)),  # w1 column chunk
                    pl.BlockSpec((1, tk), lambda i, k: (0, k)),   # b1 chunk
                    pl.BlockSpec((tk, Op), lambda i, k: (k, 0)),  # w2 row chunk
                    wspec((1, Op), lambda i, k: (0, 0)),          # b2 (invariant)
                ],
                out_specs=pl.BlockSpec((TB, Op), lambda i, k: (i, 0)),
                scratch_shapes=[pltpu.VMEM((TB, Op), jnp.float32)],
            ),
            compiler_params=pltpu.CompilerParams(
                dimension_semantics=("parallel", "arbitrary"),
                vmem_limit_bytes=vmem_bytes,
            ),
            cost_estimate=pl.CostEstimate(
                flops=flops, transcendentals=0, bytes_accessed=bytes_accessed),
        )(xp, w1p, b1p, w2p, b2p)

    try:
        yp = run(single_buffer_weights=True)
    except Exception:
        # Fallback for jax versions without pipeline_mode / pl.Buffered:
        # identical numerics, just default double-buffered weights.
        yp = run(single_buffer_weights=False)

    y = yp if (Bp == B and Op == O) else yp[:B, :O]
    return y.reshape(*orig_shape[:-1], O)


# ----------------------------------------------------------------------------
# Init + reference
# ----------------------------------------------------------------------------
def init_params(key, hidden_dim, output_dim, dtype=jnp.float32):
    """Mimics nn.Linear's U(-1/sqrt(fan_in), 1/sqrt(fan_in)) init.
    Weights are stored [in_features, out_features] (transposed vs PyTorch)."""
    k1, k2, k3, k4 = jax.random.split(key, 4)
    bound = 1.0 / jnp.sqrt(hidden_dim)
    w1 = jax.random.uniform(k1, (hidden_dim, hidden_dim), dtype, -bound, bound)
    b1 = jax.random.uniform(k2, (hidden_dim,), dtype, -bound, bound)
    w2 = jax.random.uniform(k3, (hidden_dim, output_dim), dtype, -bound, bound)
    b2 = jax.random.uniform(k4, (output_dim,), dtype, -bound, bound)
    return w1, b1, w2, b2


def reference(x, w1, b1, w2, b2):
    """f32 reference applying the same bf16 operand casts the kernel performs."""
    f32 = jnp.float32
    hi = jax.lax.Precision.HIGHEST
    xb = x.astype(jnp.bfloat16).astype(f32)
    w1b = w1.astype(jnp.bfloat16).astype(f32)
    w2b = w2.astype(jnp.bfloat16).astype(f32)
    h = jnp.maximum(jnp.dot(xb, w1b, precision=hi) + b1.astype(f32), 0.0)
    hb = h.astype(jnp.bfloat16).astype(f32)
    return jnp.dot(hb, w2b, precision=hi) + b2.astype(f32)


if __name__ == "__main__":
    key = jax.random.PRNGKey(0)
    kx1, kx2, kp1, kp2 = jax.random.split(key, 4)

    # --- 1) small head, weight-resident path --------------------------------
    batch, hidden_dim, output_dim = 8, 32, 16
    x = jax.random.normal(kx1, (batch, hidden_dim), dtype=jnp.float32)
    w1, b1, w2, b2 = init_params(kp1, hidden_dim, output_dim)
    params = prepare_params(w1, b1, w2, b2)          # pad/cast once (hoisted)
    out = jax.block_until_ready(task_head(x, params))
    ref = reference(x, w1, b1, w2, b2)
    assert out.shape == (batch, output_dim)
    assert jnp.allclose(out, ref, atol=2e-3, rtol=2e-3), \
        float(jnp.max(jnp.abs(out - ref)))

    # --- 2) ragged batch + weight-streamed path (K accumulation exercised) --
    batch, hidden_dim, output_dim = 24, 512, 192
    x = jax.random.normal(kx2, (batch, hidden_dim), dtype=jnp.float32)
    w1, b1, w2, b2 = init_params(kp2, hidden_dim, output_dim)
    params = prepare_params(w1, b1, w2, b2)
    out = jax.block_until_ready(
        task_head(x, params, force_streamed=True, tk=256))
    ref = reference(x, w1, b1, w2, b2)
    assert out.shape == (batch, output_dim)
    assert jnp.allclose(out, ref, atol=5e-3, rtol=5e-3), \
        float(jnp.max(jnp.abs(out - ref)))

    print("KERNEL_OK")
</pallas_src>

<mosaic_0001>
module attributes {stable_mosaic.version = 11 : i64} {
  func.func @_resident_kernel(%arg0: i32, %arg1: memref<16x128xf32, #tpu.memory_space<vmem>>, %arg2: memref<128x128xbf16, #tpu.memory_space<vmem>>, %arg3: memref<1x128xf32, #tpu.memory_space<vmem>>, %arg4: memref<128x128xbf16, #tpu.memory_space<vmem>>, %arg5: memref<1x128xf32, #tpu.memory_space<vmem>>, %arg6: memref<16x128xf32, #tpu.memory_space<vmem>>) attributes {dimension_semantics = [#tpu.dimension_semantics<parallel>], iteration_bounds = array<i64: 1>, scalar_prefetch = 0 : i64, scratch_operands = 0 : i64, tpu.core_type = #tpu.core_type<tc>, window_params = [{transform_indices = @transform_0, window_bounds = array<i64: 16, 128>}, {pipeline_mode = #tpu.pipeline_mode<synchronous>, transform_indices = @transform_1, window_bounds = array<i64: 128, 128>}, {pipeline_mode = #tpu.pipeline_mode<synchronous>, transform_indices = @transform_2, window_bounds = array<i64: 1, 128>}, {pipeline_mode = #tpu.pipeline_mode<synchronous>, transform_indices = @transform_3, window_bounds = array<i64: 128, 128>}, {pipeline_mode = #tpu.pipeline_mode<synchronous>, transform_indices = @transform_4, window_bounds = array<i64: 1, 128>}, {transform_indices = @transform_5, window_bounds = array<i64: 16, 128>}]} {
    %c0 = arith.constant 0 : index
    %c0_0 = arith.constant 0 : index
    %0 = vector.load %arg1[%c0, %c0_0] : memref<16x128xf32, #tpu.memory_space<vmem>>, vector<16x128xf32>
    %1 = arith.truncf %0 : vector<16x128xf32> to vector<16x128xbf16>
    %c0_1 = arith.constant 0 : index
    %c0_2 = arith.constant 0 : index
    %2 = vector.load %arg2[%c0_1, %c0_2] : memref<128x128xbf16, #tpu.memory_space<vmem>>, vector<128x128xbf16>
    %cst = arith.constant dense<0.000000e+00> : vector<16x128xf32>
    %3 = tpu.matmul %1, %2, %cst {dimension_numbers = #tpu.dot_dimension_numbers<[1], [0], [0], [1], [0, 0, 1, 1], [], []>} : vector<16x128xbf16>, vector<128x128xbf16>, vector<16x128xf32> -> vector<16x128xf32>
    %c0_3 = arith.constant 0 : index
    %c0_4 = arith.constant 0 : index
    %4 = vector.load %arg3[%c0_3, %c0_4] : memref<1x128xf32, #tpu.memory_space<vmem>>, vector<1x128xf32>
    %5 = vector.broadcast %4 : vector<1x128xf32> to vector<16x128xf32>
    %6 = arith.addf %3, %5 : vector<16x128xf32>
    %cst_5 = arith.constant 0.000000e+00 : f32
    %7 = vector.broadcast %cst_5 : f32 to vector<16x128xf32>
    %8 = arith.maximumf %6, %7 : vector<16x128xf32>
    %9 = arith.truncf %8 : vector<16x128xf32> to vector<16x128xbf16>
    %c0_6 = arith.constant 0 : index
    %c0_7 = arith.constant 0 : index
    %10 = vector.load %arg4[%c0_6, %c0_7] : memref<128x128xbf16, #tpu.memory_space<vmem>>, vector<128x128xbf16>
    %cst_8 = arith.constant dense<0.000000e+00> : vector<16x128xf32>
    %11 = tpu.matmul %9, %10, %cst_8 {dimension_numbers = #tpu.dot_dimension_numbers<[1], [0], [0], [1], [0, 0, 1, 1], [], []>} : vector<16x128xbf16>, vector<128x128xbf16>, vector<16x128xf32> -> vector<16x128xf32>
    %c0_9 = arith.constant 0 : index
    %c0_10 = arith.constant 0 : index
    %12 = vector.load %arg5[%c0_9, %c0_10] : memref<1x128xf32, #tpu.memory_space<vmem>>, vector<1x128xf32>
    %13 = vector.broadcast %12 : vector<1x128xf32> to vector<16x128xf32>
    %14 = arith.addf %11, %13 : vector<16x128xf32>
    %c0_11 = arith.constant 0 : index
    %c0_12 = arith.constant 0 : index
    %15 = vector.load %arg6[%c0_11, %c0_12] : memref<16x128xf32, #tpu.memory_space<vmem>>, vector<16x128xf32>
    tpu.vector_store %arg6[%c0_11, %c0_12], %14 {strides = array<i32>} : memref<16x128xf32, #tpu.memory_space<vmem>>, vector<16x128xf32>,
    return
  }
  func.func @transform_0(%arg0: i32) -> (i32, i32) {
    %c0_i32 = arith.constant 0 : i32
    %c0_i32_0 = arith.constant 0 : i32
    return %arg0, %c0_i32 : i32, i32
  }
  func.func @transform_1(%arg0: i32) -> (i32, i32) {
    %c0_i32 = arith.constant 0 : i32
    %c0_i32_0 = arith.constant 0 : i32
    %c0_i32_1 = arith.constant 0 : i32
    return %c0_i32, %c0_i32_0 : i32, i32
  }
  func.func @transform_2(%arg0: i32) -> (i32, i32) {
    %c0_i32 = arith.constant 0 : i32
    %c0_i32_0 = arith.constant 0 : i32
    %c0_i32_1 = arith.constant 0 : i32
    return %c0_i32, %c0_i32_0 : i32, i32
  }
  func.func @transform_3(%arg0: i32) -> (i32, i32) {
    %c0_i32 = arith.constant 0 : i32
    %c0_i32_0 = arith.constant 0 : i32
    %c0_i32_1 = arith.constant 0 : i32
    return %c0_i32, %c0_i32_0 : i32, i32
  }
  func.func @transform_4(%arg0: i32) -> (i32, i32) {
    %c0_i32 = arith.constant 0 : i32
    %c0_i32_0 = arith.constant 0 : i32
    %c0_i32_1 = arith.constant 0 : i32
    return %c0_i32, %c0_i32_0 : i32, i32
  }
  func.func @transform_5(%arg0: i32) -> (i32, i32) {
    %c0_i32 = arith.constant 0 : i32
    %c0_i32_0 = arith.constant 0 : i32
    return %arg0, %c0_i32 : i32, i32
  }
}

module attributes {stable_mosaic.version = 11 : i64} {
  func.func @_resident_kernel(%arg0: i32, %arg1: memref<16x128xf32, #tpu.memory_space<vmem>>, %arg2: memref<128x128xbf16, #tpu.memory_space<vmem>>, %arg3: memref<1x128xf32, #tpu.memory_space<vmem>>, %arg4: memref<128x128xbf16, #tpu.memory_space<vmem>>, %arg5: memref<1x128xf32, #tpu.memory_space<vmem>>, %arg6: memref<16x128xf32, #tpu.memory_space<vmem>>) attributes {dimension_semantics = [#tpu.dimension_semantics<parallel>], iteration_bounds = array<i64: 1>, scalar_prefetch = 0 : i64, scratch_operands = 0 : i64, tpu.core_type = #tpu.core_type<tc>, window_params = [{transform_indices = @transform_0, window_bounds = array<i64: 16, 128>}, {pipeline_mode = #tpu.pipeline_mode<synchronous>, transform_indices = @transform_1, window_bounds = array<i64: 128, 128>}, {pipeline_mode = #tpu.pipeline_mode<synchronous>, transform_indices = @transform_2, window_bounds = array<i64: 1, 128>}, {pipeline_mode = #tpu.pipeline_mode<synchronous>, transform_indices = @transform_3, window_bounds = array<i64: 128, 128>}, {pipeline_mode = #tpu.pipeline_mode<synchronous>, transform_indices = @transform_4, window_bounds = array<i64: 1, 128>}, {transform_indices = @transform_5, window_bounds = array<i64: 16, 128>}]} {
    %c0 = arith.constant 0 : index
    %c0_0 = arith.constant 0 : index
    %0 = vector.load %arg1[%c0, %c0_0] : memref<16x128xf32, #tpu.memory_space<vmem>>, vector<16x128xf32>
    %1 = arith.truncf %0 : vector<16x128xf32> to vector<16x128xbf16>
    %c0_1 = arith.constant 0 : index
    %c0_2 = arith.constant 0 : index
    %2 = vector.load %arg2[%c0_1, %c0_2] : memref<128x128xbf16, #tpu.memory_space<vmem>>, vector<128x128xbf16>
    %cst = arith.constant dense<0.000000e+00> : vector<16x128xf32>
    %3 = tpu.matmul %1, %2, %cst {dimension_numbers = #tpu.dot_dimension_numbers<[1], [0], [0], [1], [0, 0, 1, 1], [], []>} : vector<16x128xbf16>, vector<128x128xbf16>, vector<16x128xf32> -> vector<16x128xf32>
    %c0_3 = arith.constant 0 : index
    %c0_4 = arith.constant 0 : index
    %4 = vector.load %arg3[%c0_3, %c0_4] : memref<1x128xf32, #tpu.memory_space<vmem>>, vector<1x128xf32>
    %5 = vector.broadcast %4 : vector<1x128xf32> to vector<16x128xf32>
    %6 = arith.addf %3, %5 : vector<16x128xf32>
    %cst_5 = arith.constant 0.000000e+00 : f32
    %7 = vector.broadcast %cst_5 : f32 to vector<16x128xf32>
    %8 = arith.maximumf %6, %7 : vector<16x128xf32>
    %9 = arith.truncf %8 : vector<16x128xf32> to vector<16x128xbf16>
    %c0_6 = arith.constant 0 : index
    %c0_7 = arith.constant 0 : index
    %10 = vector.load %arg4[%c0_6, %c0_7] : memref<128x128xbf16, #tpu.memory_space<vmem>>, vector<128x128xbf16>
    %cst_8 = arith.constant dense<0.000000e+00> : vector<16x128xf32>
    %11 = tpu.matmul %9, %10, %cst_8 {dimension_numbers = #tpu.dot_dimension_numbers<[1], [0], [0], [1], [0, 0, 1, 1], [], []>} : vector<16x128xbf16>, vector<128x128xbf16>, vector<16x128xf32> -> vector<16x128xf32>
    %c0_9 = arith.constant 0 : index
    %c0_10 = arith.constant 0 : index
    %12 = vector.load %arg5[%c0_9, %c0_10] : memref<1x128xf32, #tpu.memory_space<vmem>>, vector<1x128xf32>
    %13 = vector.broadcast %12 : vector<1x128xf32> to vector<16x128xf32>
    %14 = arith.addf %11, %13 : vector<16x128xf32>
    %c0_11 = arith.constant 0 : index
    %c0_12 = arith.constant 0 : index
    %15 = vector.load %arg6[%c0_11, %c0_12] : memref<16x128xf32, #tpu.memory_space<vmem>>, vector<16x128xf32>
    tpu.vector_store %arg6[%c0_11, %c0_12], %14 {strides = array<i32>} : memref<16x128xf32, #tpu.memory_space<vmem>>, vector<16x128xf32>,
    return
  }
  func.func @transform_0(%arg0: i32) -> (i32, i32) {
    %c0_i32 = arith.constant 0 : i32
    %c0_i32_0 = arith.constant 0 : i32
    return %arg0, %c0_i32 : i32, i32
  }
  func.func @transform_1(%arg0: i32) -> (i32, i32) {
    %c0_i32 = arith.constant 0 : i32
    %c0_i32_0 = arith.constant 0 : i32
    %c0_i32_1 = arith.constant 0 : i32
    return %c0_i32, %c0_i32_0 : i32, i32
  }
  func.func @transform_2(%arg0: i32) -> (i32, i32) {
    %c0_i32 = arith.constant 0 : i32
    %c0_i32_0 = arith.constant 0 : i32
    %c0_i32_1 = arith.constant 0 : i32
    return %c0_i32, %c0_i32_0 : i32, i32
  }
  func.func @transform_3(%arg0: i32) -> (i32, i32) {
    %c0_i32 = arith.constant 0 : i32
    %c0_i32_0 = arith.constant 0 : i32
    %c0_i32_1 = arith.constant 0 : i32
    return %c0_i32, %c0_i32_0 : i32, i32
  }
  func.func @transform_4(%arg0: i32) -> (i32, i32) {
    %c0_i32 = arith.constant 0 : i32
    %c0_i32_0 = arith.constant 0 : i32
    %c0_i32_1 = arith.constant 0 : i32
    return %c0_i32, %c0_i32_0 : i32, i32
  }
  func.func @transform_5(%arg0: i32) -> (i32, i32) {
    %c0_i32 = arith.constant 0 : i32
    %c0_i32_0 = arith.constant 0 : i32
    return %arg0, %c0_i32 : i32, i32
  }
}

</mosaic_0001>

<bundles_post_ra>
// kernel: tpu_custom_call.1
= control target key start
LH: loop header
LB: loop body
LE: loop exit
PB: predicated region body
PF: predicated region fallthrough
CT: control target
= control target key end

     0   :  { %10 = vsyncpa [#allocation3], 0  ;;  %s514_s0 = inlined_call_operand.hbm [shape: f32[16,128], index: 0, kind: input, shape index: {}]   ;;  %s515_s1 = inlined_call_operand.hbm [shape: bf16[128,128], index: 1, kind: input, shape index: {}]   ;;  %s516_s2 = inlined_call_operand.vmem [shape: f32[1,128], index: 2, kind: input, shape index: {}]   ;;  %s517_s3 = inlined_call_operand.hbm [shape: bf16[128,128], index: 3, kind: input, shape index: {}]   ;;  %s518_s4 = inlined_call_operand.vmem [shape: f32[1,128], index: 4, kind: input, shape index: {}]   ;;  %s519_s5 = inlined_call_operand.hbm [shape: f32[16,128], index: 5, kind: output, shape index: {}]  }
   0x1   :  { %11 = vsyncpa [#allocation6], 0  ;;  %s30_s20 = sshll.u32 %s515_s1, 4  ;;  %s31_s20 = int_to_ptr.hbm [resolvable:$true] %s30_s20 }
   0x2   :  { %12 = vsyncpa [#allocation4], 0  ;;  %s452_s21 = smov [#allocation5]   ;;  %s17_s25 = sshll.u32 %s514_s0, 4  ;;  %s18_s25 = int_to_ptr.hbm [resolvable:$true] %s17_s25 }
   0x3   :  { %s32_s22 = sshll.u32 %s452_s21, 4  ;;  %s453_s26 = smov 64   ;;  %s33_s22 = int_to_ptr.vmem [resolvable:$true] %s32_s22 }
   0x4   :  { %s454_s27 = smov 4   ;;  %s455_s28 = smov [#allocation2]  }
   0x5   :  { %38 = dma.hbm_to_vmem [thread:$0]  %s31_s20, 1024, %s33_s22, [#allocation6], %s453_s26, %s453_s26, %s454_s27  }
   0x6   :  { %s19_s29 = sshll.u32 %s455_s28, 4  ;;  %s456_s30 = smov 128   ;;  %s20_s29 = int_to_ptr.vmem [resolvable:$true] %s19_s29 }
   0x7   :  { %s457_s6 = smov 8   ;;  %s45_s8 = sshll.u32 %s517_s3, 4  ;;  %s46_s8 = int_to_ptr.hbm [resolvable:$true] %s45_s8 }
   0x8   :  { %25 = dma.hbm_to_vmem [thread:$0]  %s18_s25, 256, %s20_s29, [#allocation3], %s456_s30, %s456_s30, %s457_s6  }
   0x9   :  { %s458_s9 = smov [#allocation7]  }
   0xa   :  { %s47_s0 = sshll.u32 %s458_s9, 4  ;;  %s48_s0 = int_to_ptr.vmem [resolvable:$true] %s47_s0 }
   0xb   :  { %53 = dma.hbm_to_vmem [thread:$0]  %s46_s8, 1024, %s48_s0, [#allocation6], %s453_s26, %s453_s26, %s454_s27  }
   0xc   :  { %446 = dma.done.wait [#allocation3], 256  }
   0xd   :  { %447 = vsyncadd [#allocation3], 4294967040 }
   0xe   :  { %448 = dma.done.wait [#allocation6], 2048  }
   0xf   :  { %449 = vsyncadd [#allocation6], 4294965248  ;;  %v331_v0 = vld [vmem:[#allocation5 + $0x38] sm:$0xff]  ;;  %v330_v1 = vld [vmem:[#allocation5 + $0x30] sm:$0xff]  ;;  %s459_s13 = smov [#allocation8]  }
  0x10   :  { %139 = vmatpush.bf16.msra.mxu0 %v331_v0  ;;  %v339_v2 = vld [vmem:[#allocation7 + $0x38] sm:$0xff]  ;;  %v338_v3 = vld [vmem:[#allocation7 + $0x30] sm:$0xff]  ;;  %v329_v4 = vld [vmem:[#allocation5 + $0x28] sm:$0xff]  ;;  %s244_s14 = sshll.u32 %s459_s13, 4  ;;  %s245_s14 = int_to_ptr.vmem [resolvable:$true] %s244_s14 }
  0x11   :  { %224 = vmatpush.bf16.msra.mxu1 %v339_v2  ;;  %v337_v5 = vld [vmem:[#allocation7 + $0x28] sm:$0xff]  ;;  %v328_v6 = vld [vmem:[#allocation5 + $0x20] sm:$0xff]  ;;  %v327_v8 = vld [vmem:[#allocation5 + $0x18] sm:$0xff] }
  0x12   :  { %v336_v7 = vld [vmem:[#allocation7 + $0x20] sm:$0xff]  ;;  %v326_v9 = vld [vmem:[#allocation5 + $0x10] sm:$0xff]  ;;  %v325_v10 = vld [vmem:[#allocation5 + $0x8] sm:$0xff] }
  0x13   :  { %v324_v11 = vld [vmem:[#allocation5] sm:$0xff]  ;;  %v68_v12 = vld [vmem:[#allocation2] sm:$0xff]  ;;  %v69_v13 = vld [vmem:[#allocation2 + $0x8] sm:$0xff] }
  0x14   :  { %140 = vmatpush.bf16.msra.mxu0 %v330_v1  ;;  %v70_v14 = vpack.c.bf16 %v69_v13, %v68_v12  ;;  %v335_v15 = vld [vmem:[#allocation7 + $0x18] sm:$0xff]  ;;  %v334_v16 = vld [vmem:[#allocation7 + $0x10] sm:$0xff]  ;;  %v333_v17 = vld [vmem:[#allocation7 + $0x8] sm:$0xff] }
  0x15   :  { %225 = vmatpush.bf16.msra.mxu1 %v338_v3  ;;  %v332_v18 = vld [vmem:[#allocation7] sm:$0xff]  ;;  %v348_v20 = vld [vmem:[%s516_s2] ss:$0 sm:$0xff]  ;;  %s246_s2 = sshll.u32 %s519_s5, 4  ;;  %s247_s2 = int_to_ptr.hbm [resolvable:$true] %s246_s2 }
  0x16   :  { %v349_v27 = vld [vmem:[%s518_s4] ss:$0 sm:$0xff] }
  0x18   :  { %141 = vmatpush.bf16.msra.mxu0 %v329_v4 }
  0x19   :  { %226 = vmatpush.bf16.msra.mxu1 %v337_v5 }
  0x1c   :  { %142 = vmatpush.bf16.msra.mxu0 %v328_v6 }
  0x1d   :  { %227 = vmatpush.bf16.msra.mxu1 %v336_v7 }
  0x20   :  { %143 = vmatpush.bf16.msra.mxu0 %v327_v8 }
  0x21   :  { %228 = vmatpush.bf16.msra.mxu1 %v335_v15 }
  0x24   :  { %144 = vmatpush.bf16.msra.mxu0 %v326_v9 }
  0x25   :  { %229 = vmatpush.bf16.msra.mxu1 %v334_v16 }
  0x28   :  { %145 = vmatpush.bf16.msra.mxu0 %v325_v10 }
  0x29   :  { %230 = vmatpush.bf16.msra.mxu1 %v333_v17 }
  0x2c   :  { %146 = vmatpush.bf16.msra.mxu0 %v324_v11 }
  0x2d   :  { %231 = vmatpush.bf16.msra.mxu1 %v332_v18 }
  0x2f   :  { %147 = vmatmul.bf16.vlgmr.msra.gmra.mxu0 %v70_v14 }
  0xac   :  { %v148_v19 = vpop.f32.mrf.mxu0 }
  0xad   :  { %v149_v21 = vadd.f32 %v348_v20, %v148_v19 }
  0xaf   :  { %v153_v24 = vmax.f32 %v149_v21, 0.0 }
  0xb4   :  { %v150_v22 = vpop.f32.mrf.mxu0 }
  0xb5   :  { %v151_v23 = vadd.f32 %v348_v20, %v150_v22 }
  0xb7   :  { %v154_v25 = vmax.f32 %v151_v23, 0.0 }
  0xb9   :  { %v155_v26 = vpack.c.bf16 %v154_v25, %v153_v24 }
  0xbb   :  { %232 = vmatmul.bf16.vlgmr.msra.gmra.mxu1 %v155_v26 }
 0x138   :  { %v233_v28 = vpop.f32.mrf.mxu1 }
 0x139   :  { %v234_v29 = vadd.f32 %v349_v27, %v233_v28 }
 0x13b   :  { %238 = vst [vmem:[#allocation8] sm:$0xff] %v234_v29 }
 0x140   :  { %v235_v30 = vpop.f32.mrf.mxu1 }
 0x141   :  { %v236_v31 = vadd.f32 %v349_v27, %v235_v30 }
 0x143   :  { %239 = vst [vmem:[#allocation8 + $0x8] sm:$0xff] %v236_v31 }
 0x144   :  { %252 = dma.vmem_to_hbm [thread:$0]  %s245_s14, 256, %s247_s2, [#allocation4], %s456_s30, %s456_s30, %s457_s6  }
 0x145   :  { %450 = dma.done.wait [#allocation4], 256  }
 0x146   :  { %451 = vsyncadd [#allocation4], 4294967040 }
 0x147   :  { %257 = vsyncpa [#allocation3], 1 }
 0x148   :  { %258 = vsyncpa [#allocation6], 1 }
 0x149   :  { %259 = vsyncpa [#allocation4], 1 }

// kernel: tpu_custom_call.1
= control target key start
LH: loop header
LB: loop body
LE: loop exit
PB: predicated region body
PF: predicated region fallthrough
CT: control target
= control target key end

     0   :  { %10 = vsyncpa [#allocation3], 0  ;;  %s514_s0 = inlined_call_operand.hbm [shape: f32[16,128], index: 0, kind: input, shape index: {}]   ;;  %s515_s1 = inlined_call_operand.hbm [shape: bf16[128,128], index: 1, kind: input, shape index: {}]   ;;  %s516_s2 = inlined_call_operand.vmem [shape: f32[1,128], index: 2, kind: input, shape index: {}]   ;;  %s517_s3 = inlined_call_operand.hbm [shape: bf16[128,128], index: 3, kind: input, shape index: {}]   ;;  %s518_s4 = inlined_call_operand.vmem [shape: f32[1,128], index: 4, kind: input, shape index: {}]   ;;  %s519_s5 = inlined_call_operand.hbm [shape: f32[16,128], index: 5, kind: output, shape index: {}]  }
   0x1   :  { %11 = vsyncpa [#allocation6], 0  ;;  %s30_s20 = sshll.u32 %s515_s1, 4  ;;  %s31_s20 = int_to_ptr.hbm [resolvable:$true] %s30_s20 }
   0x2   :  { %12 = vsyncpa [#allocation4], 0  ;;  %s452_s21 = smov [#allocation5]   ;;  %s17_s25 = sshll.u32 %s514_s0, 4  ;;  %s18_s25 = int_to_ptr.hbm [resolvable:$true] %s17_s25 }
   0x3   :  { %s32_s22 = sshll.u32 %s452_s21, 4  ;;  %s453_s26 = smov 64   ;;  %s33_s22 = int_to_ptr.vmem [resolvable:$true] %s32_s22 }
   0x4   :  { %s454_s27 = smov 4   ;;  %s455_s28 = smov [#allocation2]  }
   0x5   :  { %38 = dma.hbm_to_vmem [thread:$0]  %s31_s20, 1024, %s33_s22, [#allocation6], %s453_s26, %s453_s26, %s454_s27  }
   0x6   :  { %s19_s29 = sshll.u32 %s455_s28, 4  ;;  %s456_s30 = smov 128   ;;  %s20_s29 = int_to_ptr.vmem [resolvable:$true] %s19_s29 }
   0x7   :  { %s457_s6 = smov 8   ;;  %s45_s8 = sshll.u32 %s517_s3, 4  ;;  %s46_s8 = int_to_ptr.hbm [resolvable:$true] %s45_s8 }
   0x8   :  { %25 = dma.hbm_to_vmem [thread:$0]  %s18_s25, 256, %s20_s29, [#allocation3], %s456_s30, %s456_s30, %s457_s6  }
   0x9   :  { %s458_s9 = smov [#allocation7]  }
   0xa   :  { %s47_s0 = sshll.u32 %s458_s9, 4  ;;  %s48_s0 = int_to_ptr.vmem [resolvable:$true] %s47_s0 }
   0xb   :  { %53 = dma.hbm_to_vmem [thread:$0]  %s46_s8, 1024, %s48_s0, [#allocation6], %s453_s26, %s453_s26, %s454_s27  }
   0xc   :  { %446 = dma.done.wait [#allocation3], 256  }
   0xd   :  { %447 = vsyncadd [#allocation3], 4294967040 }
   0xe   :  { %448 = dma.done.wait [#allocation6], 2048  }
   0xf   :  { %449 = vsyncadd [#allocation6], 4294965248  ;;  %v331_v0 = vld [vmem:[#allocation5 + $0x38] sm:$0xff]  ;;  %v330_v1 = vld [vmem:[#allocation5 + $0x30] sm:$0xff]  ;;  %s459_s13 = smov [#allocation8]  }
  0x10   :  { %139 = vmatpush.bf16.msra.mxu0 %v331_v0  ;;  %v339_v2 = vld [vmem:[#allocation7 + $0x38] sm:$0xff]  ;;  %v338_v3 = vld [vmem:[#allocation7 + $0x30] sm:$0xff]  ;;  %v329_v4 = vld [vmem:[#allocation5 + $0x28] sm:$0xff]  ;;  %s244_s14 = sshll.u32 %s459_s13, 4  ;;  %s245_s14 = int_to_ptr.vmem [resolvable:$true] %s244_s14 }
  0x11   :  { %224 = vmatpush.bf16.msra.mxu1 %v339_v2  ;;  %v337_v5 = vld [vmem:[#allocation7 + $0x28] sm:$0xff]  ;;  %v328_v6 = vld [vmem:[#allocation5 + $0x20] sm:$0xff]  ;;  %v327_v8 = vld [vmem:[#allocation5 + $0x18] sm:$0xff] }
  0x12   :  { %v336_v7 = vld [vmem:[#allocation7 + $0x20] sm:$0xff]  ;;  %v326_v9 = vld [vmem:[#allocation5 + $0x10] sm:$0xff]  ;;  %v325_v10 = vld [vmem:[#allocation5 + $0x8] sm:$0xff] }
  0x13   :  { %v324_v11 = vld [vmem:[#allocation5] sm:$0xff]  ;;  %v68_v12 = vld [vmem:[#allocation2] sm:$0xff]  ;;  %v69_v13 = vld [vmem:[#allocation2 + $0x8] sm:$0xff] }
  0x14   :  { %140 = vmatpush.bf16.msra.mxu0 %v330_v1  ;;  %v70_v14 = vpack.c.bf16 %v69_v13, %v68_v12  ;;  %v335_v15 = vld [vmem:[#allocation7 + $0x18] sm:$0xff]  ;;  %v334_v16 = vld [vmem:[#allocation7 + $0x10] sm:$0xff]  ;;  %v333_v17 = vld [vmem:[#allocation7 + $0x8] sm:$0xff] }
  0x15   :  { %225 = vmatpush.bf16.msra.mxu1 %v338_v3  ;;  %v332_v18 = vld [vmem:[#allocation7] sm:$0xff]  ;;  %v348_v20 = vld [vmem:[%s516_s2] ss:$0 sm:$0xff]  ;;  %s246_s2 = sshll.u32 %s519_s5, 4  ;;  %s247_s2 = int_to_ptr.hbm [resolvable:$true] %s246_s2 }
  0x16   :  { %v349_v27 = vld [vmem:[%s518_s4] ss:$0 sm:$0xff] }
  0x18   :  { %141 = vmatpush.bf16.msra.mxu0 %v329_v4 }
  0x19   :  { %226 = vmatpush.bf16.msra.mxu1 %v337_v5 }
  0x1c   :  { %142 = vmatpush.bf16.msra.mxu0 %v328_v6 }
  0x1d   :  { %227 = vmatpush.bf16.msra.mxu1 %v336_v7 }
  0x20   :  { %143 = vmatpush.bf16.msra.mxu0 %v327_v8 }
  0x21   :  { %228 = vmatpush.bf16.msra.mxu1 %v335_v15 }
  0x24   :  { %144 = vmatpush.bf16.msra.mxu0 %v326_v9 }
  0x25   :  { %229 = vmatpush.bf16.msra.mxu1 %v334_v16 }
  0x28   :  { %145 = vmatpush.bf16.msra.mxu0 %v325_v10 }
  0x29   :  { %230 = vmatpush.bf16.msra.mxu1 %v333_v17 }
  0x2c   :  { %146 = vmatpush.bf16.msra.mxu0 %v324_v11 }
  0x2d   :  { %231 = vmatpush.bf16.msra.mxu1 %v332_v18 }
  0x2f   :  { %147 = vmatmul.bf16.vlgmr.msra.gmra.mxu0 %v70_v14 }
  0xac   :  { %v148_v19 = vpop.f32.mrf.mxu0 }
  0xad   :  { %v149_v21 = vadd.f32 %v348_v20, %v148_v19 }
  0xaf   :  { %v153_v24 = vmax.f32 %v149_v21, 0.0 }
  0xb4   :  { %v150_v22 = vpop.f32.mrf.mxu0 }
  0xb5   :  { %v151_v23 = vadd.f32 %v348_v20, %v150_v22 }
  0xb7   :  { %v154_v25 = vmax.f32 %v151_v23, 0.0 }
  0xb9   :  { %v155_v26 = vpack.c.bf16 %v154_v25, %v153_v24 }
  0xbb   :  { %232 = vmatmul.bf16.vlgmr.msra.gmra.mxu1 %v155_v26 }
 0x138   :  { %v233_v28 = vpop.f32.mrf.mxu1 }
 0x139   :  { %v234_v29 = vadd.f32 %v349_v27, %v233_v28 }
 0x13b   :  { %238 = vst [vmem:[#allocation8] sm:$0xff] %v234_v29 }
 0x140   :  { %v235_v30 = vpop.f32.mrf.mxu1 }
 0x141   :  { %v236_v31 = vadd.f32 %v349_v27, %v235_v30 }
 0x143   :  { %239 = vst [vmem:[#allocation8 + $0x8] sm:$0xff] %v236_v31 }
 0x144   :  { %252 = dma.vmem_to_hbm [thread:$0]  %s245_s14, 256, %s247_s2, [#allocation4], %s456_s30, %s456_s30, %s457_s6  }
 0x145   :  { %450 = dma.done.wait [#allocation4], 256  }
 0x146   :  { %451 = vsyncadd [#allocation4], 4294967040 }
 0x147   :  { %257 = vsyncpa [#allocation3], 1 }
 0x148   :  { %258 = vsyncpa [#allocation6], 1 }
 0x149   :  { %259 = vsyncpa [#allocation4], 1 }

</bundles_post_ra>
